<compile_context>
chip_gen: v5e
topology: v5e:2x2
jax: 0.10.0
libtpu: 0.0.40
codegen_flags: <defaults>
</compile_context>

<pallas_src>
import functools

import jax
import jax.numpy as jnp
from jax.experimental import pallas as pl
from jax.experimental.pallas import tpu as pltpu

LANE = 128                       # TPU lane width
_VMEM_BUDGET = 4 * 1024 * 1024   # bytes per pipeline buffer set (x2 double buffering ~= 8 MiB)
_MAX_BLOCK_COLS = 16384          # hard cap on block width (lanes)


def _midas_mse_kernel(p_ref, t_ref, m_ref, loss_ref, msum_ref, *,
                      width, block_cols, nj_inner, needs_col_mask):
    """Accumulate per-(image, column-chunk) partial sums.

    p_ref/t_ref/m_ref : (1, H, TW) input blocks (native dtype, upcast here).
    loss_ref/msum_ref : (1, 1, TW) resident output blocks, accumulated across the innermost
                        ("arbitrary") grid axis; zeroed on its first step.
    """
    j = pl.program_id(2)

    @pl.when(j == 0)
    def _init():
        loss_ref[...] = jnp.zeros_like(loss_ref)
        msum_ref[...] = jnp.zeros_like(msum_ref)

    p = p_ref[...].astype(jnp.float32)   # in-kernel upcast keeps HBM traffic at native width
    t = t_ref[...].astype(jnp.float32)
    w = m_ref[...].astype(jnp.float32)   # int8 / float mask -> {0.0, 1.0}
    d = p - t

    if needs_col_mask:
        # The last column block may extend past W; its DMA'd contents are undefined (possibly
        # NaN/Inf), so force those lanes to contribute exactly 0 to both sums.  The validity
        # test is computed on a single (1, 1, TW) slab and broadcast over sublanes.
        s = pl.program_id(1)
        col0 = (s * nj_inner + j) * block_cols
        col = jax.lax.broadcasted_iota(jnp.int32, (1, 1, block_cols), 2) + col0
        valid = col < width
        d = jnp.where(valid, d, 0.0)
        w = jnp.where(valid, w, 0.0)

    # Sublane (XLU) reduction keeps the accumulator small and lane-dense: (1, 1, TW).
    loss_ref[...] += jnp.sum(d * d * w, axis=1, keepdims=True)
    msum_ref[...] += jnp.sum(w, axis=1, keepdims=True)


def midas_mse_loss(prediction, target, mask, reduction_type="batch", block_cols=None):
    """Pallas MiDaS MSE loss.  prediction/target: float (B, H, W); mask: bool/int/float (B, H, W)."""
    assert prediction.shape == target.shape == mask.shape
    assert prediction.ndim == 3, "expected (batch, 32, mult)-style inputs"
    B, H, W = prediction.shape

    # Stream the mask as 1 byte/elem instead of casting it to f32 in HBM.
    if mask.dtype == jnp.bool_:
        mask = mask.astype(jnp.int8)

    bytes_per_col = H * (prediction.dtype.itemsize + target.dtype.itemsize + mask.dtype.itemsize)
    if block_cols is None:
        cap = (_VMEM_BUDGET // max(1, bytes_per_col)) // LANE * LANE
        cap = max(LANE, min(cap, _MAX_BLOCK_COLS))
        if W % LANE == 0:
            tw = min(W, cap)
        elif W <= cap:
            tw = W                      # whole width in one block -> no ragged tail at all
        else:
            tw = cap                    # multiple of 128; ragged tail masked in-kernel
    else:
        tw = min(int(block_cols), W)
        if tw < W and tw % LANE != 0:
            raise ValueError("block_cols must be a multiple of 128 when it does not cover W")
    # TODO(synk): also tile H if H * TW * itemsizes ever exceeds the VMEM budget (spec uses H=32).

    nj_total = pl.cdiv(W, tw)
    # 2-way column-chunk split (only when it divides evenly) lets both v7x TensorCores work even
    # at batch=1; harmless on single-TC v5e/v6e.
    nsuper = 2 if (nj_total >= 2 and nj_total % 2 == 0) else 1
    nj_inner = nj_total // nsuper
    needs_col_mask = (nj_total * tw) != W

    kernel = functools.partial(_midas_mse_kernel, width=W, block_cols=tw,
                               nj_inner=nj_inner, needs_col_mask=needs_col_mask)

    part_shape = jax.ShapeDtypeStruct((B * nsuper, 1, tw), jnp.float32)
    in_spec = pl.BlockSpec((1, H, tw), lambda b, s, j: (b, 0, s * nj_inner + j))
    out_spec = pl.BlockSpec((1, 1, tw), lambda b, s, j: (b * nsuper + s, 0, 0))

    loss_part, mask_part = pl.pallas_call(
        kernel,
        out_shape=(part_shape, part_shape),
        grid_spec=pltpu.PrefetchScalarGridSpec(
            num_scalar_prefetch=0,
            grid=(B, nsuper, nj_inner),
            in_specs=[in_spec, in_spec, in_spec],
            out_specs=[out_spec, out_spec],
        ),
        compiler_params=pltpu.CompilerParams(
            dimension_semantics=("parallel", "parallel", "arbitrary")),
    )(prediction, target, mask)

    # Tiny epilogue == nerfstudio masked_reduction, on (B, nsuper*TW) f32 partials.
    image_loss = jnp.sum(loss_part.reshape(B, -1), axis=1)     # (B,)
    summed_mask = jnp.sum(mask_part.reshape(B, -1), axis=1)    # (B,)

    if reduction_type == "batch":
        divisor = 2.0 * jnp.sum(summed_mask)
        safe = jnp.where(divisor > 0, divisor, 1.0)
        return jnp.where(divisor > 0, jnp.sum(image_loss) / safe, 0.0)
    elif reduction_type == "image":
        denom = 2.0 * summed_mask
        safe = jnp.where(denom > 0, denom, 1.0)
        return jnp.mean(jnp.where(denom > 0, image_loss / safe, 0.0))
    raise ValueError(f"unknown reduction_type: {reduction_type}")


def _reference(prediction, target, mask, reduction_type="batch"):
    p = prediction.astype(jnp.float32)
    t = target.astype(jnp.float32)
    m = mask.astype(jnp.float32)
    image_loss = jnp.sum((p - t) ** 2 * m, axis=(1, 2))
    summed_mask = jnp.sum(m, axis=(1, 2))
    if reduction_type == "batch":
        divisor = 2.0 * jnp.sum(summed_mask)
        safe = jnp.where(divisor > 0, divisor, 1.0)
        return jnp.where(divisor > 0, jnp.sum(image_loss) / safe, 0.0)
    denom = 2.0 * summed_mask
    safe = jnp.where(denom > 0, denom, 1.0)
    return jnp.mean(jnp.where(denom > 0, image_loss / safe, 0.0))


if __name__ == "__main__":
    key = jax.random.PRNGKey(0)
    k1, k2, k3 = jax.random.split(key, 3)
    B, H, W = 1, 32, 384                                    # matches the (1, 32, mult) annotation
    prediction = jax.random.normal(k1, (B, H, W), dtype=jnp.float32)
    target = jax.random.normal(k2, (B, H, W), dtype=jnp.float32)
    mask = jax.random.bernoulli(k3, 0.7, (B, H, W))         # Bool mask of valid pixels

    # (1) forced small column blocks -> multi-step grid, parallel 2-way split, masked ragged tail
    out = midas_mse_loss(prediction, target, mask, block_cols=256)
    jax.block_until_ready(out)
    ref = _reference(prediction, target, mask)
    assert jnp.allclose(out, ref, rtol=1e-5, atol=1e-6), (out, ref)

    # (2) default (single large block) sizing
    out = midas_mse_loss(prediction, target, mask)
    assert jnp.allclose(out, ref, rtol=1e-5, atol=1e-6), (out, ref)

    # (3) 'image' reduction type
    out_img = midas_mse_loss(prediction, target, mask, reduction_type="image")
    ref_img = _reference(prediction, target, mask, reduction_type="image")
    assert jnp.allclose(out_img, ref_img, rtol=1e-5, atol=1e-6), (out_img, ref_img)

    # (4) bf16 inputs streamed natively, upcast in-kernel
    pred_bf = prediction.astype(jnp.bfloat16)
    targ_bf = target.astype(jnp.bfloat16)
    out_bf = midas_mse_loss(pred_bf, targ_bf, mask, block_cols=256)
    ref_bf = _reference(pred_bf, targ_bf, mask)
    assert jnp.allclose(out_bf, ref_bf, rtol=1e-4, atol=1e-6), (out_bf, ref_bf)

    # (5) empty mask -> divisor guard returns exactly 0
    out0 = midas_mse_loss(prediction, target, jnp.zeros_like(mask))
    assert jnp.allclose(out0, 0.0), out0

    print("KERNEL_OK")
</pallas_src>

<mosaic_0001>
module attributes {stable_mosaic.version = 11 : i64} {
  func.func @_midas_mse_kernel(%arg0: i32, %arg1: i32, %arg2: i32, %arg3: memref<1x32x256xf32, #tpu.memory_space<vmem>>, %arg4: memref<1x32x256xf32, #tpu.memory_space<vmem>>, %arg5: memref<1x32x256xi8, #tpu.memory_space<vmem>>, %arg6: memref<1x1x256xf32, #tpu.memory_space<vmem>>, %arg7: memref<1x1x256xf32, #tpu.memory_space<vmem>>) attributes {dimension_semantics = [#tpu.dimension_semantics<parallel>, #tpu.dimension_semantics<parallel>, #tpu.dimension_semantics<arbitrary>], iteration_bounds = array<i64: 1, 2, 1>, scalar_prefetch = 0 : i64, scratch_operands = 0 : i64, tpu.core_type = #tpu.core_type<tc>, window_params = [{transform_indices = @transform_0, window_bounds = array<i64: 1, 32, 256>}, {transform_indices = @transform_1, window_bounds = array<i64: 1, 32, 256>}, {transform_indices = @transform_2, window_bounds = array<i64: 1, 32, 256>}, {transform_indices = @transform_3, window_bounds = array<i64: 1, 1, 256>}, {transform_indices = @transform_4, window_bounds = array<i64: 1, 1, 256>}]} {
    %c0_i32 = arith.constant 0 : i32
    %0 = arith.cmpi eq, %arg2, %c0_i32 : i32
    %1 = arith.extui %0 : i1 to i32
    %c0_i32_0 = arith.constant 0 : i32
    %2 = arith.cmpi ne, %1, %c0_i32_0 : i32
    scf.if %2 {
      %cst_24 = arith.constant 0.000000e+00 : f32
      %36 = vector.broadcast %cst_24 : f32 to vector<1x1x256xf32>
      %c0_25 = arith.constant 0 : index
      %c0_26 = arith.constant 0 : index
      %c0_27 = arith.constant 0 : index
      %37 = vector.load %arg6[%c0_25, %c0_26, %c0_27] : memref<1x1x256xf32, #tpu.memory_space<vmem>>, vector<1x1x256xf32>
      tpu.vector_store %arg6[%c0_25, %c0_26, %c0_27], %36 {strides = array<i32>} : memref<1x1x256xf32, #tpu.memory_space<vmem>>, vector<1x1x256xf32>,
      %cst_28 = arith.constant 0.000000e+00 : f32
      %38 = vector.broadcast %cst_28 : f32 to vector<1x1x256xf32>
      %c0_29 = arith.constant 0 : index
      %c0_30 = arith.constant 0 : index
      %c0_31 = arith.constant 0 : index
      %39 = vector.load %arg7[%c0_29, %c0_30, %c0_31] : memref<1x1x256xf32, #tpu.memory_space<vmem>>, vector<1x1x256xf32>
      tpu.vector_store %arg7[%c0_29, %c0_30, %c0_31], %38 {strides = array<i32>} : memref<1x1x256xf32, #tpu.memory_space<vmem>>, vector<1x1x256xf32>,
    } else {
    }
    %c0 = arith.constant 0 : index
    %c0_1 = arith.constant 0 : index
    %c0_2 = arith.constant 0 : index
    %3 = vector.load %arg3[%c0, %c0_1, %c0_2] : memref<1x32x256xf32, #tpu.memory_space<vmem>>, vector<1x32x256xf32>
    %c0_3 = arith.constant 0 : index
    %c0_4 = arith.constant 0 : index
    %c0_5 = arith.constant 0 : index
    %4 = vector.load %arg4[%c0_3, %c0_4, %c0_5] : memref<1x32x256xf32, #tpu.memory_space<vmem>>, vector<1x32x256xf32>
    %c0_6 = arith.constant 0 : index
    %c0_7 = arith.constant 0 : index
    %c0_8 = arith.constant 0 : index
    %5 = vector.load %arg5[%c0_6, %c0_7, %c0_8] : memref<1x32x256xi8, #tpu.memory_space<vmem>>, vector<1x32x256xi8>
    %6 = arith.sitofp %5 : vector<1x32x256xi8> to vector<1x32x256xf32>
    %7 = arith.subf %3, %4 : vector<1x32x256xf32>
    %c1_i32 = arith.constant 1 : i32
    %8 = arith.muli %arg1, %c1_i32 : i32
    %9 = arith.addi %8, %arg2 : i32
    %c256_i32 = arith.constant 256 : i32
    %10 = arith.muli %9, %c256_i32 : i32
    %11 = tpu.iota {dimensions = array<i32: 2>} : vector<1x1x256xi32>
    %12 = vector.broadcast %10 : i32 to vector<1x1x256xi32>
    %13 = arith.addi %11, %12 : vector<1x1x256xi32>
    %c384_i32 = arith.constant 384 : i32
    %14 = vector.broadcast %c384_i32 : i32 to vector<1x1x256xi32>
    %15 = arith.cmpi slt, %13, %14 : vector<1x1x256xi32>
    %cst = arith.constant 0.000000e+00 : f32
    %16 = vector.shape_cast %15 : vector<1x1x256xi1> to vector<1x1x256xi1>
    %17 = vector.broadcast %16 : vector<1x1x256xi1> to vector<1x32x256xi1>
    %18 = vector.broadcast %cst : f32 to vector<1x32x256xf32>
    %19 = arith.select %17, %7, %18 : vector<1x32x256xi1>, vector<1x32x256xf32>
    %cst_9 = arith.constant 0.000000e+00 : f32
    %20 = vector.shape_cast %15 : vector<1x1x256xi1> to vector<1x1x256xi1>
    %21 = vector.broadcast %20 : vector<1x1x256xi1> to vector<1x32x256xi1>
    %22 = vector.broadcast %cst_9 : f32 to vector<1x32x256xf32>
    %23 = arith.select %21, %6, %22 : vector<1x32x256xi1>, vector<1x32x256xf32>
    %c0_10 = arith.constant 0 : index
    %c0_11 = arith.constant 0 : index
    %c0_12 = arith.constant 0 : index
    %24 = vector.load %arg6[%c0_10, %c0_11, %c0_12] : memref<1x1x256xf32, #tpu.memory_space<vmem>>, vector<1x1x256xf32>
    %25 = arith.mulf %19, %19 : vector<1x32x256xf32>
    %26 = arith.mulf %25, %23 : vector<1x32x256xf32>
    %cst_13 = arith.constant dense<0.000000e+00> : vector<1x256xf32>
    %27 = vector.multi_reduction <add>, %26, %cst_13 [1] : vector<1x32x256xf32> to vector<1x256xf32>
    %28 = vector.shape_cast %27 : vector<1x256xf32> to vector<1x1x256xf32>
    %29 = arith.addf %24, %28 : vector<1x1x256xf32>
    %c0_14 = arith.constant 0 : index
    %c0_15 = arith.constant 0 : index
    %c0_16 = arith.constant 0 : index
    %30 = vector.load %arg6[%c0_14, %c0_15, %c0_16] : memref<1x1x256xf32, #tpu.memory_space<vmem>>, vector<1x1x256xf32>
    tpu.vector_store %arg6[%c0_14, %c0_15, %c0_16], %29 {strides = array<i32>} : memref<1x1x256xf32, #tpu.memory_space<vmem>>, vector<1x1x256xf32>,
    %c0_17 = arith.constant 0 : index
    %c0_18 = arith.constant 0 : index
    %c0_19 = arith.constant 0 : index
    %31 = vector.load %arg7[%c0_17, %c0_18, %c0_19] : memref<1x1x256xf32, #tpu.memory_space<vmem>>, vector<1x1x256xf32>
    %cst_20 = arith.constant dense<0.000000e+00> : vector<1x256xf32>
    %32 = vector.multi_reduction <add>, %23, %cst_20 [1] : vector<1x32x256xf32> to vector<1x256xf32>
    %33 = vector.shape_cast %32 : vector<1x256xf32> to vector<1x1x256xf32>
    %34 = arith.addf %31, %33 : vector<1x1x256xf32>
    %c0_21 = arith.constant 0 : index
    %c0_22 = arith.constant 0 : index
    %c0_23 = arith.constant 0 : index
    %35 = vector.load %arg7[%c0_21, %c0_22, %c0_23] : memref<1x1x256xf32, #tpu.memory_space<vmem>>, vector<1x1x256xf32>
    tpu.vector_store %arg7[%c0_21, %c0_22, %c0_23], %34 {strides = array<i32>} : memref<1x1x256xf32, #tpu.memory_space<vmem>>, vector<1x1x256xf32>,
    return
  }
  func.func @transform_0(%arg0: i32, %arg1: i32, %arg2: i32) -> (i32, i32, i32) {
    %c1_i32 = arith.constant 1 : i32
    %0 = arith.muli %arg1, %c1_i32 : i32
    %1 = arith.addi %0, %arg2 : i32
    %c0_i32 = arith.constant 0 : i32
    %c0_i32_0 = arith.constant 0 : i32
    return %arg0, %c0_i32, %1 : i32, i32, i32
  }
  func.func @transform_1(%arg0: i32, %arg1: i32, %arg2: i32) -> (i32, i32, i32) {
    %c1_i32 = arith.constant 1 : i32
    %0 = arith.muli %arg1, %c1_i32 : i32
    %1 = arith.addi %0, %arg2 : i32
    %c0_i32 = arith.constant 0 : i32
    %c0_i32_0 = arith.constant 0 : i32
    return %arg0, %c0_i32, %1 : i32, i32, i32
  }
  func.func @transform_2(%arg0: i32, %arg1: i32, %arg2: i32) -> (i32, i32, i32) {
    %c1_i32 = arith.constant 1 : i32
    %0 = arith.muli %arg1, %c1_i32 : i32
    %1 = arith.addi %0, %arg2 : i32
    %c0_i32 = arith.constant 0 : i32
    %c0_i32_0 = arith.constant 0 : i32
    return %arg0, %c0_i32, %1 : i32, i32, i32
  }
  func.func @transform_3(%arg0: i32, %arg1: i32, %arg2: i32) -> (i32, i32, i32) {
    %c2_i32 = arith.constant 2 : i32
    %0 = arith.muli %arg0, %c2_i32 : i32
    %1 = arith.addi %0, %arg1 : i32
    %c0_i32 = arith.constant 0 : i32
    %c0_i32_0 = arith.constant 0 : i32
    %c0_i32_1 = arith.constant 0 : i32
    return %1, %c0_i32, %c0_i32_0 : i32, i32, i32
  }
  func.func @transform_4(%arg0: i32, %arg1: i32, %arg2: i32) -> (i32, i32, i32) {
    %c2_i32 = arith.constant 2 : i32
    %0 = arith.muli %arg0, %c2_i32 : i32
    %1 = arith.addi %0, %arg1 : i32
    %c0_i32 = arith.constant 0 : i32
    %c0_i32_0 = arith.constant 0 : i32
    %c0_i32_1 = arith.constant 0 : i32
    return %1, %c0_i32, %c0_i32_0 : i32, i32, i32
  }
}

</mosaic_0001>

<bundles_post_ra>
// kernel: tpu_custom_call.1
= control target key start
LH: loop header
LB: loop body
LE: loop exit
PB: predicated region body
PF: predicated region fallthrough
CT: control target
= control target key end

     0   :  { %10 = vsyncpa [#allocation3], 0  ;;  %s1456_s0 = inlined_call_operand.hbm [shape: f32[1,32,384], index: 0, kind: input, shape index: {}]   ;;  %s1457_s1 = inlined_call_operand.hbm [shape: f32[1,32,384], index: 1, kind: input, shape index: {}]   ;;  %s1458_s2 = inlined_call_operand.hbm [shape: s8[1,32,384], index: 2, kind: input, shape index: {}]   ;;  %s1459_s3 = inlined_call_operand.hbm [shape: f32[2,1,256], index: 3, kind: output, shape index: {0}]   ;;  %s1460_s4 = inlined_call_operand.hbm [shape: f32[2,1,256], index: 4, kind: output, shape index: {1}]  }
   0x1   :  { %12 = vsyncpa [#allocation3 + $0x1], 0 }
   0x2   :  { %13 = vsyncpa [#allocation6], 0 }
   0x3   :  { %15 = vsyncpa [#allocation6 + $0x1], 0 }
   0x4   :  { %16 = vsyncpa [#allocation4], 0 }
   0x5   :  { %18 = vsyncpa [#allocation4 + $0x1], 0 }
   0x6   :  { %19 = vsyncpa [#allocation10], 0 }
   0x7   :  { %21 = vsyncpa [#allocation10 + $0x1], 0  ;;  %s1153_s15 = smov 0   ;;  %s1155_s16 = smov 0  }
   0x8   :  { %s1157_s17 = smov 0   ;;  %s1159_s18 = smov 0  }
   0x9   :  { %s1161_s19 = smov 0   ;;  %s1163_s20 = smov 0  }
   0xa LB: > { %1464 = sst [smem:[#allocation15_spill]] %s1098_s15  ;;  %s1184_s21 = sadd.s32 4294967295, %s1118_s20   ;;  %s1118_s20 = sphi %s1163_s20, %s27_s20   ;;  %s1114_s19 = sphi %s1161_s19, %s1485_s19   ;;  %s1110_s18 = sphi %s1159_s18, %s1484_s18   ;;  %s1106_s17 = sphi %s1157_s17, %s1483_s17   ;;  %s1102_s16 = sphi %s1155_s16, %s1482_s16   ;;  %s1098_s15 = sphi %s1153_s15, %s1481_s15  }
   0xb   : > { %s769_s22 = sadd.s32 4294967294, %s1118_s20   ;;  %s42_s23 = sadd.s32 1, %s1114_s19 }
   0xc   : > { %s57_s24 = sadd.s32 1, %s1106_s17  ;;  %p44_p0 = scmp.ge.s32.totalorder %s42_s23, 2 }
   0xd   : > { %p64_p1 = scmp.ne.s32.totalorder %s1106_s17, %s1102_s16  ;;  %p65_p2 = scmp.eq.s32.totalorder %s1118_s20, 0 }
   0xe   : > { %p70_p3 = scmp.ne.s32.totalorder %s1102_s16, %s1098_s15  ;;  %s1487_s23 = smov (%p44_p0, %s42_s23), 0 }
   0xf   : > { %1465 = sst [smem:[#allocation16_spill]] %s1487_s23  ;;  %p1196_p4 = por %p65_p2, %p64_p1 }
  0x10   : > { %p71_p5 = scmp.eq.s32.totalorder %s1184_s21, 0  ;;  %s53_s26 = ssub.s32 %s1114_s19, %s1487_s23 }
  0x11   : > { %p158_p6 = scmp.eq.s32.totalorder %s1184_s21, 1  ;;  %p55_p7 = scmp.eq.s32.totalorder %s53_s26, 0 }
  0x12   : > { %p1204_p8 = por %p71_p5, %p70_p3  ;;  %p164_p10 = scmp.eq.s32.totalorder %s769_s22, 1 }
  0x13   : > { %p1208_p9 = por %p158_p6, %p64_p1  ;;  %p771_p12 = scmp.ge.s32.totalorder %s1118_s20, 2 }
  0x14   : > { %s1213_s29 = scalar_select %p55_p7, %s1106_s17, %s57_s24  }
  0x15   : > { %p1215_p11 = por %p164_p10, %p70_p3  ;;  %210 = sbr.rel (%p771_p12) target bundleno = 113 (0x71), region = 16 }
  0x16   : > { %1469 = sst [smem:[#allocation17_spill]] %s1213_s29 }
  0x17   : > { %s1470_s30 = scalar_select %p1215_p11, 1, 0 }
  0x19   : > { %1471 = sst [smem:[#allocation18_spill]] %s1470_s30 }
  0x1a   : > { %213 = sbr.rel (!%p1196_p4) target bundleno = 52 (0x34), region = 20  ;;  %s214_s5 = sand.u32 (%p1196_p4), 1, %s1106_s17  }
  0x1b   : > { %s773_s6 = sshll.u32 (%p1196_p4), %s1114_s19, 1  ;;  %s772_s7 = sshll.u32 (%p1196_p4), %s214_s5, 6 }
  0x1c   : > { %s221_s8 = ssub.s32 (%p1196_p4), 3, %s773_s6  ;;  %s1229_s12 = scalar_lea.sflag (%p1196_p4), [#allocation3], %s214_s5 }
  0x1d   : > { %p222_p13 = scmp.lt.s32.totalorder (%p1196_p4), %s221_s8, 2  ;;  %s218_s13 = scalar_lea.vmem (%p1196_p4), [#allocation2], %s772_s7 }
  0x1f   : > { %s1489_s8 = smov (!%p222_p13, %s221_s8), 2 }
  0x20   : > { %s774_s9 = sshll.u32 %s1489_s8, 5 }
  0x21   : > { %s225_s10 = ssub.s32 64, %s774_s9 }
  0x22   : > { %s226_s11 = sshll.u32 %s225_s10, 4 }
  0x23   : > { %227 = vsyncadd %s1229_s12, %s226_s11  ;;  %p1232_p0 = scmp.ne.s32.totalorder %s774_s9, 0  ;;  %s808_s22 = sshll.u32 %s1114_s19, 4 }
  0x24   : > { %s232_s6 = scalar_lea.hbm %s1456_s0, %s808_s22  ;;  %s777_s23 = sshll.u32 %s1489_s8, 3 }
  0x25   : > { %s235_s10 = sshll.u32 %s232_s6, 4  ;;  %s237_s5 = sshll.u32 %s218_s13, 4  ;;  %s236_s10 = int_to_ptr.hbm [resolvable:$true] %s235_s10  ;;  %s238_s5 = int_to_ptr.vmem [resolvable:$true] %s237_s5 }
  0x26   : > { %s810_s7 = sshll.u32 %s1489_s8, 9  ;;  %s902_s29 = sshra.s32 %s238_s5, 4  ;;  %s903_s29 = int_to_ptr.vmem [resolvable:$true] %s902_s29 }
  0x27   : > { %s885_s11 = sshrl.u32 %s810_s7, 4  ;;  %s1120_s9 = smov [#allocation2]  }
  0x28   : > { %s909_s30 = scalar_lea.vmem %s903_s29, %s885_s11  ;;  %s913_s15 = scalar_lea.vmem %s1120_s9, 128 }
  0x29   : > { %p910_p1 = scmp.ne.s32.totalorder %s903_s29, %s909_s30  ;;  %p915_p5 = scmp.lt.s32.totalorder %s913_s15, %s909_s30 }
  0x2b   : > { %p911_p2 = pnand %p910_p1, %p1232_p0 }
  0x2d   : > { %p912_p3 = pneg %p911_p2 }
  0x2f   : > { %p917_p6 = pnand %p915_p5, %p912_p3 }
  0x31   : > { %920 = shalt.err (!%p917_p6)
}
  0x32   : > { %s1121_s22 = smov 384   ;;  %s1122_s13 = smov 256  }
  0x33   : > { %243 = dma.hbm_to_vmem [thread:$0]  (%p1232_p0), %s236_s10, %s810_s7, %s238_s5, %s1229_s12, %s1121_s22, %s1122_s13, %s777_s23  }
  0x34 PF: > { %246 = sbr.rel (!%p1196_p4) target bundleno = 78 (0x4e), region = 24  ;;  %s247_s29 = sand.u32 (%p1196_p4), 1, %s1118_s20  }
  0x35   : > { %s249_s8 = sand.u32 (%p1196_p4), 1, %s1106_s17   ;;  %s781_s26 = sshll.u32 (%p1196_p4), %s1114_s19, 1 }
  0x36   : > { %s780_s24 = sshll.u32 (%p1196_p4), %s249_s8, 6  ;;  %s254_s15 = ssub.s32 (%p1196_p4), 3, %s781_s26 }
  0x37   : > { %p255_p7 = scmp.lt.s32.totalorder (%p1196_p4), %s254_s15, 2  ;;  %s1255_s23 = scalar_lea.sflag (%p1196_p4), [#allocation6], %s247_s29 }
  0x38   : > { %s251_s12 = scalar_lea.vmem (%p1196_p4), [#allocation5], %s780_s24 }
  0x39   : > { %s1491_s15 = smov (!%p255_p7, %s254_s15), 2 }
  0x3a   : > { %s782_s30 = sshll.u32 %s1491_s15, 5 }
  0x3b   : > { %s258_s6 = ssub.s32 64, %s782_s30 }
  0x3c   : > { %s259_s14 = sshll.u32 %s258_s6, 4 }
  0x3d   : > { %260 = vsyncadd %s1255_s23, %s259_s14  ;;  %p1258_p10 = scmp.ne.s32.totalorder %s782_s30, 0  ;;  %s811_s5 = sshll.u32 %s1114_s19, 4 }
  0x3e   : > { %s265_s9 = scalar_lea.hbm %s1457_s1, %s811_s5  ;;  %s785_s22 = sshll.u32 %s1491_s15, 3 }
  0x3f   : > { %s268_s13 = sshll.u32 %s265_s9, 4  ;;  %s270_s29 = sshll.u32 %s251_s12, 4  ;;  %s269_s13 = int_to_ptr.hbm [resolvable:$true] %s268_s13  ;;  %s271_s29 = int_to_ptr.vmem [resolvable:$true] %s270_s29 }
  0x40   : > { %s813_s8 = sshll.u32 %s1491_s15, 9  ;;  %s941_s26 = sshra.s32 %s271_s29, 4  ;;  %s942_s26 = int_to_ptr.vmem [resolvable:$true] %s941_s26 }
  0x41   : > { %s924_s24 = sshrl.u32 %s813_s8, 4  ;;  %s1123_s30 = smov [#allocation5]  }
  0x42   : > { %s948_s6 = scalar_lea.vmem %s942_s26, %s924_s24  ;;  %s952_s14 = scalar_lea.vmem %s1123_s30, 128 }
  0x43   : > { %p949_p13 = scmp.ne.s32.totalorder %s942_s26, %s948_s6  ;;  %p954_p2 = scmp.lt.s32.totalorder %s952_s14, %s948_s6 }
  0x45   : > { %p950_p0 = pnand %p949_p13, %p1258_p10 }
  0x47   : > { %p951_p1 = pneg %p950_p0 }
  0x49   : > { %p956_p3 = pnand %p954_p2, %p951_p1 }
  0x4b   : > { %959 = shalt.err (!%p956_p3)
}
  0x4c   : > { %s1124_s5 = smov 384   ;;  %s1125_s12 = smov 256  }
  0x4d   : > { %276 = dma.hbm_to_vmem [thread:$0]  (%p1258_p10), %s269_s13, %s813_s8, %s271_s29, %s1255_s23, %s1124_s5, %s1125_s12, %s785_s22  }
  0x4e PF: > { %279 = sbr.rel (!%p1196_p4) target bundleno = 113 (0x71), region = 28  ;;  %s280_s15 = sand.u32 (%p1196_p4), 1, %s1118_s20  }
  0x4f   : > { %s282_s7 = sand.u32 (%p1196_p4), 1, %s1106_s17   ;;  %s789_s9 = sshll.u32 (%p1196_p4), %s1114_s19, 1 }
  0x50   : > { %s788_s11 = sshll.u32 (%p1196_p4), %s282_s7, 4  ;;  %s287_s24 = ssub.s32 (%p1196_p4), 3, %s789_s9 }
  0x51   : > { %p288_p5 = scmp.lt.s32.totalorder (%p1196_p4), %s287_s24, 2  ;;  %s1281_s23 = scalar_lea.sflag (%p1196_p4), [#allocation6], %s280_s15 }
  0x52   : > { %s284_s25 = scalar_lea.vmem (%p1196_p4), [#allocation7], %s788_s11 }
  0x53   : > { %s1493_s24 = smov (!%p288_p5, %s287_s24), 2 }
  0x54   : > { %s790_s26 = sshll.u32 %s1493_s24, 3 }
  0x55   : > { %s291_s6 = ssub.s32 16, %s790_s26 }
  0x56   : > { %s292_s10 = sshll.u32 %s291_s6, 4 }
  0x57   : > { %293 = vsyncadd %s1281_s23, %s292_s10  ;;  %p1284_p4 = scmp.ne.s32.totalorder %s790_s26, 0  ;;  %s814_s13 = sshll.u32 %s1114_s19, 4 }
  0x58   : > { %s298_s30 = scalar_lea.hbm %s1458_s2, %s814_s13  ;;  %s794_s14 = sshll.u32 %s1493_s24, 7 }
  0x59   : > { %s301_s5 = sshll.u32 %s298_s30, 4  ;;  %s303_s12 = sshll.u32 %s284_s25, 4  ;;  %s302_s5 = int_to_ptr.hbm [resolvable:$true] %s301_s5  ;;  %s304_s12 = int_to_ptr.vmem [resolvable:$true] %s303_s12 }
  0x5a   : > { %s961_s15 = sshra.s32 %s302_s5, 4  ;;  %s963_s7 = sshrl.u32 %s794_s14, 4  ;;  %s962_s15 = int_to_ptr.hbm [resolvable:$true] %s961_s15 }
  0x5b   : > { %s968_s11 = scalar_lea.hbm %s962_s15, %s963_s7  ;;  %s972_s6 = scalar_lea.hbm %s1458_s2, 24 }
  0x5c   : > { %p969_p6 = scmp.ne.s32.totalorder %s962_s15, %s968_s11  ;;  %p974_p13 = scmp.lt.s32.totalorder %s972_s6, %s968_s11 }
  0x5e   : > { %p970_p7 = pnand %p969_p6, %p1284_p4 }
  0x60   : > { %p971_p10 = pneg %p970_p7 }
  0x62   : > { %p976_p0 = pnand %p974_p13, %p971_p10 }
  0x64   : > { %979 = shalt.err (!%p976_p0)
}
  0x65   : > { %s980_s10 = sshra.s32 %s304_s12, 4  ;;  %s1126_s13 = smov [#allocation7]   ;;  %s981_s10 = int_to_ptr.vmem [resolvable:$true] %s980_s10 }
  0x66   : > { %s987_s25 = scalar_lea.vmem %s981_s10, %s963_s7  ;;  %s991_s29 = scalar_lea.vmem %s1126_s13, 32 }
  0x67   : > { %p988_p1 = scmp.ne.s32.totalorder %s981_s10, %s987_s25  ;;  %p993_p5 = scmp.lt.s32.totalorder %s991_s29, %s987_s25 }
  0x69   : > { %p989_p2 = pnand %p988_p1, %p1284_p4 }
  0x6b   : > { %p990_p3 = pneg %p989_p2 }
  0x6d   : > { %p995_p6 = pnand %p993_p5, %p990_p3 }
  0x6f   : > { %998 = shalt.err (!%p995_p6)
}
  0x70   : > { %306 = dma.hbm_to_vmem [thread:$0]  (%p1284_p4), %s302_s5, %s794_s14, %s304_s12, %s1281_s23  }
  0x71 PF: > { %p795_p7 = scmp.ge.s32.totalorder %s1118_s20, 1  ;;  %p308_p10 = scmp.lt.s32.totalorder %s1118_s20, 3 }
  0x73   : > { %p309_p13 = pnand %p795_p7, %p308_p10 }
  0x74   : > { %s1310_s8 = sand.u32 (!%p309_p13), 1, %s1102_s16  }
  0x75   : > { %312 = sbr.rel (%p309_p13) target bundleno = 184 (0xb8), region = 32  ;;  %s796_s30 = sshll.u32 (!%p309_p13), %s1310_s8, 6 }
  0x76   : > { %s315_s22 = scalar_lea.sflag (!%p309_p13), [#allocation3], %s1310_s8  ;;  %s1314_s15 = scalar_lea.vmem (!%p309_p13), [#allocation2], %s796_s30 }
  0x7a   : > { %1081 = dma.done.wait (%p1204_p8), %s315_s22, 1024  }
  0x7b   : > { %1083 = vsyncadd (%p1204_p8), %s315_s22, 4294966272  ;;  %s324_s24 = sand.u32 1, %s1184_s21   ;;  %s1321_s14 = scalar_lea.vmem [#allocation5], %s796_s30 }
  0x7c   : > { %s325_s23 = scalar_lea.sflag [#allocation6], %s324_s24 }
  0x7d   : > { %1085 = dma.done.wait (%p1204_p8), %s325_s23, 1280  }
  0x7e   : > { %1087 = vsyncadd (%p1204_p8), %s325_s23, 4294966016  ;;  %s799_s5 = sshll.u32 %s1310_s8, 1  ;;  %v405_v0 = vlaneseq  ;;  %s801_s21 = sshll.u32 %s1110_s18, 8  ;;  %v1127_v3 = vmov 0.0   ;;  %v411_v7 = vld [vmem:[%s1314_s15] sm:$0xff]  ;;  %v412_v8 = vld [vmem:[%s1314_s15 + $0x8] sm:$0xff] }
  0x7f   : > { %s1333_s12 = scalar_lea.vmem [#allocation8], %s799_s5  ;;  %v458_v5 = vstv %s801_s21  ;;  %s1338_s27 = scalar_lea.vmem [#allocation9], %s799_s5  ;;  %v413_v10 = vld [vmem:[%s1314_s15 + $0x10] sm:$0xff]  ;;  %v414_v11 = vld [vmem:[%s1314_s15 + $0x18] sm:$0xff]  ;;  %v415_v12 = vld [vmem:[%s1314_s15 + $0x20] sm:$0xff]  ;;  %vm521_vm3 = vcmask 1040384  }
  0x80   : > { %vm1328_vm0 = vcmp.lt.s32.totalorder %v405_v0, 256  ;;  %v456_v2 = vand.u32 127, %v405_v0  ;;  %s798_s7 = sshll.u32 %s1310_s8, 4  ;;  %v416_v13 = vld [vmem:[%s1314_s15 + $0x28] sm:$0xff]  ;;  %v417_v14 = vld [vmem:[%s1314_s15 + $0x30] sm:$0xff]  ;;  %v419_v15 = vld [vmem:[%s1321_s14] sm:$0xff] }
  0x81   : > { %409 = vst.msk [vmem:[%s1333_s12] sm:$0x3] %vm1328_vm0, %v1127_v3  ;;  %v420_v16 = vld [vmem:[%s1321_s14 + $0x8] sm:$0xff]  ;;  %v421_v17 = vld [vmem:[%s1321_s14 + $0x10] sm:$0xff]  ;;  %v422_v18 = vld [vmem:[%s1321_s14 + $0x18] sm:$0xff]  ;;  %v445_v19 = vsub.f32 %v411_v7, %v419_v15  ;;  %s338_s11 = scalar_lea.vmem [#allocation7], %s798_s7 }
  0x82   : > { %v457_v4 = vadd.s32 128, %v456_v2  ;;  %410 = vst.msk [vmem:[%s1338_s27] sm:$0x3] %vm1328_vm0, %v1127_v3  ;;  %v1343_v6 = vadd.s32 %v458_v5, %v456_v2  ;;  %v423_v20 = vld [vmem:[%s1321_s14 + $0x20] sm:$0xff]  ;;  %v424_v21 = vld [vmem:[%s1321_s14 + $0x28] sm:$0xff]  ;;  %v425_v22 = vld [vmem:[%s1321_s14 + $0x30] sm:$0xff]  ;;  %v446_v23 = vsub.f32 %v412_v8, %v420_v16  ;;  %v447_v24 = vsub.f32 %v413_v10, %v421_v17 }
  0x83   : > { %v448_v25 = vsub.f32 %v414_v11, %v422_v18  ;;  %v427_v26 = vld [vmem:[%s338_s11] sm:$0xff]  ;;  %v428_v27 = vld [vmem:[%s338_s11 + $0x8] sm:$0xff]  ;;  %v449_v28 = vsub.f32 %v415_v12, %v423_v20  ;;  %v450_v29 = vsub.f32 %v416_v13, %v424_v21  ;;  %v451_v30 = vsub.f32 %v417_v14, %v425_v22  ;;  %s804_s9 = sshll.u32 %s1110_s18, 1  ;;  %s576_s29 = sshll.u32 %s1333_s12, 4  ;;  %s577_s29 = int_to_ptr.vmem [resolvable:$true] %s576_s29 }
  0x84   : > { %v460_v9 = vadd.s32 %v458_v5, %v457_v4  ;;  %vm461_vm1 = vcmp.lt.s32.totalorder %v1343_v6, 384  ;;  %v429_v32 = vunpack.c.0.s8 %v427_v26  ;;  %v430_v33 = vunpack.c.0.s8 %v428_v27  ;;  %v418_v36 = vld [vmem:[%s1314_s15 + $0x38] sm:$0xff]  ;;  %s574_s10 = scalar_lea.hbm %s1459_s3, %s804_s9  ;;  %s590_s13 = scalar_lea.hbm %s1460_s4, %s804_s9 }
  0x85   : > { %v467_v31 = vsel %vm461_vm1, %v445_v19, 0.0  ;;  %v431_v34 = vunpack.c.1.s8 %v427_v26  ;;  %v432_v35 = vunpack.c.1.s8 %v428_v27  ;;  %v426_v37 = vld [vmem:[%s1321_s14 + $0x38] sm:$0xff]  ;;  %v433_v38 = vunpack.c.2.s8 %v427_v26  ;;  %s578_s30 = sshll.u32 %s574_s10, 4  ;;  %s592_s22 = sshll.u32 %s1338_s27, 4  ;;  %s579_s30 = int_to_ptr.hbm [resolvable:$true] %s578_s30  ;;  %s1398_s22 = int_to_ptr.vmem [resolvable:$true] %s592_s22 }
  0x86   : > { %vm462_vm2 = vcmp.lt.s32.totalorder %v460_v9, 384  ;;  %v434_v39 = vunpack.c.2.s8 %v428_v27  ;;  %v435_v40 = vunpack.c.3.s8 %v427_v26  ;;  %v436_v41 = vunpack.c.3.s8 %v428_v27  ;;  %s594_s15 = sshll.u32 %s590_s13, 4  ;;  %s557_s24 = scalar_lea.sflag [#allocation4], %s1310_s8  ;;  %s1400_s15 = int_to_ptr.hbm [resolvable:$true] %s594_s15 }
  0x87   : > { %v437_v42 = vcvt.s32.f32 %v429_v32  ;;  %v438_v43 = vcvt.s32.f32 %v430_v33  ;;  %v439_v44 = vcvt.s32.f32 %v431_v34  ;;  %v440_v45 = vcvt.s32.f32 %v432_v35  ;;  %s1014_s23 = sshra.s32 %s579_s30, 4  ;;  %s1020_s7 = scalar_lea.hbm %s1459_s3, 4  ;;  %s1015_s23 = int_to_ptr.hbm [resolvable:$true] %s1014_s23 }
  0x88   : > { %v441_v46 = vcvt.s32.f32 %v433_v38  ;;  %v442_v47 = vcvt.s32.f32 %v434_v39  ;;  %v443_v48 = vcvt.s32.f32 %v435_v40  ;;  %v444_v49 = vcvt.s32.f32 %v436_v41  ;;  %s1016_s14 = scalar_lea.hbm %s1015_s23, 2  ;;  %p1021_p1 = scmp.lt.s32.totalorder %s1015_s23, %s1459_s3 }
  0x89   : > { %v452_v50 = vsub.f32 %v418_v36, %v426_v37  ;;  %v468_v51 = vsel %vm462_vm2, %v446_v23, 0.0  ;;  %v469_v52 = vsel %vm461_vm1, %v447_v24, 0.0  ;;  %v470_v53 = vsel %vm462_vm2, %v448_v25, 0.0  ;;  %p1017_p8 = scmp.ne.s32.totalorder %s1015_s23, %s1016_s14  ;;  %p1022_p2 = scmp.lt.s32.totalorder %s1020_s7, %s1016_s14 }
  0x8a   : > { %v471_v54 = vsel %vm461_vm1, %v449_v28, 0.0  ;;  %v472_v55 = vsel %vm462_vm2, %v450_v29, 0.0  ;;  %v473_v56 = vsel %vm461_vm1, %v451_v30, 0.0  ;;  %v475_v57 = vsel %vm461_vm1, %v437_v42, 0.0 }
  0x8b   : > { %v474_v58 = vsel %vm462_vm2, %v452_v50, 0.0  ;;  %v476_v59 = vsel %vm462_vm2, %v438_v43, 0.0  ;;  %v477_v60 = vsel %vm461_vm1, %v439_v44, 0.0  ;;  %v478_v61 = vsel %vm462_vm2, %v440_v45, 0.0  ;;  %p1018_p4 = pnand %p1017_p8, %p1208_p9  ;;  %p1023_p3 = por %p1022_p2, %p1021_p1 }
  0x8c   : > { %v479_v62 = vsel %vm461_vm1, %v441_v46, 0.0  ;;  %v480_v63 = vsel %vm462_vm2, %v442_v47, 0.0  ;;  %v481_v0 = vsel %vm461_vm1, %v443_v48, 0.0  ;;  %v482_v2 = vsel %vm462_vm2, %v444_v49, 0.0 }
  0x8d   : > { %v484_v3 = vmul.f32 %v467_v31, %v467_v31  ;;  %v485_v4 = vmul.f32 %v468_v51, %v468_v51  ;;  %v486_v5 = vmul.f32 %v469_v52, %v469_v52  ;;  %v487_v7 = vmul.f32 %v470_v53, %v470_v53  ;;  %p1019_p0 = pneg %p1018_p4 }
  0x8e   : > { %v488_v8 = vmul.f32 %v471_v54, %v471_v54  ;;  %v489_v10 = vmul.f32 %v472_v55, %v472_v55  ;;  %v490_v11 = vmul.f32 %v473_v56, %v473_v56  ;;  %v491_v12 = vmul.f32 %v474_v58, %v474_v58  ;;  %v483_v55 = vld [vmem:[%s1333_s12] sm:$0x3] }
  0x8f   : > { %v492_v13 = vmul.f32 %v484_v3, %v475_v57  ;;  %v493_v14 = vmul.f32 %v485_v4, %v476_v59  ;;  %v494_v15 = vmul.f32 %v486_v5, %v477_v60  ;;  %v495_v16 = vmul.f32 %v487_v7, %v478_v61  ;;  %p1024_p5 = pnand %p1023_p3, %p1019_p0 }
  0x90   : > { %v496_v17 = vmul.f32 %v488_v8, %v479_v62  ;;  %v497_v18 = vmul.f32 %v489_v10, %v480_v63  ;;  %v498_v19 = vmul.f32 %v490_v11, %v481_v0  ;;  %v499_v20 = vmul.f32 %v491_v12, %v482_v2 }
  0x91   : > { %v500_v6 = vadd.f32 %v494_v15, %v492_v13  ;;  %v509_v21 = vadd.f32 %v495_v16, %v493_v14  ;;  %v531_v9 = vadd.f32 %v477_v60, %v475_v57  ;;  %v540_v22 = vadd.f32 %v478_v61, %v476_v59  ;;  %v530_v57 = vld [vmem:[%s1338_s27] sm:$0x3] }
  0x93   : > { %v501_v23 = vadd.f32 %v500_v6, %v496_v17  ;;  %v510_v24 = vadd.f32 %v509_v21, %v497_v18  ;;  %v532_v25 = vadd.f32 %v531_v9, %v479_v62  ;;  %v541_v26 = vadd.f32 %v540_v22, %v480_v63 }
  0x95   : > { %v502_v27 = vadd.f32 %v501_v23, %v498_v19  ;;  %v511_v28 = vadd.f32 %v510_v24, %v499_v20  ;;  %v533_v29 = vadd.f32 %v532_v25, %v481_v0  ;;  %v542_v30 = vadd.f32 %v541_v26, %v482_v2 }
  0x97   : > { %v503_v31 = vrot.slane %v502_v27, 4  ;;  %v512_v32 = vrot.slane %v511_v28, 4  ;;  %v534_v33 = vrot.slane %v533_v29, 4  ;;  %v543_v34 = vrot.slane %v542_v30, 4 }
  0x99   : > { %v504_v35 = vadd.f32 %v503_v31, %v502_v27  ;;  %v513_v36 = vadd.f32 %v512_v32, %v511_v28  ;;  %v535_v37 = vadd.f32 %v534_v33, %v533_v29  ;;  %v544_v38 = vadd.f32 %v543_v34, %v542_v30 }
  0x9b   : > { %v505_v39 = vrot.slane %v504_v35, 2  ;;  %v514_v40 = vrot.slane %v513_v36, 2  ;;  %v536_v41 = vrot.slane %v535_v37, 2  ;;  %v545_v42 = vrot.slane %v544_v38, 2 }
  0x9d   : > { %v506_v43 = vadd.f32 %v505_v39, %v504_v35  ;;  %v515_v44 = vadd.f32 %v514_v40, %v513_v36  ;;  %v537_v45 = vadd.f32 %v536_v41, %v535_v37  ;;  %v546_v46 = vadd.f32 %v545_v42, %v544_v38 }
  0x9f   : > { %v507_v47 = vrot.slane %v506_v43, 1  ;;  %v516_v48 = vrot.slane %v515_v44, 1  ;;  %v538_v49 = vrot.slane %v537_v45, 1  ;;  %v547_v50 = vrot.slane %v546_v46, 1 }
  0xa1   : > { %v508_v51 = vadd.f32 %v507_v47, %v506_v43  ;;  %v517_v52 = vadd.f32 %v516_v48, %v515_v44  ;;  %v539_v53 = vadd.f32 %v538_v49, %v537_v45  ;;  %v548_v54 = vadd.f32 %v547_v50, %v546_v46 }
  0xa3   : > { %v520_v56 = vrot.slane %v517_v52, 7  ;;  %v551_v58 = vrot.slane %v548_v54, 7 }
  0xa5   : > { %v522_v59 = vsel %vm521_vm3, %v508_v51, %v520_v56  ;;  %v552_v60 = vsel %vm521_vm3, %v539_v53, %v551_v58 }
  0xa6   : > { %v524_v61 = vadd.f32 %v522_v59, %v483_v55  ;;  %v554_v62 = vadd.f32 %v552_v60, %v530_v57 }
  0xa8   : > { %529 = vst.msk [vmem:[%s1333_s12] sm:$0x3] %vm1328_vm0, %v524_v61 }
  0xa9   : > { %555 = vst.msk [vmem:[%s1338_s27] sm:$0x3] %vm1328_vm0, %v554_v62 }
  0xaa   : > { %1027 = shalt.err (!%p1024_p5)
}
  0xab   : > { %818 = dma.vmem_to_hbm [thread:$0]  (%p1208_p9), %s577_s29, 32, %s579_s30, %s557_s24  }
  0xac   : > { %s562_s12 = scalar_lea.sflag [#allocation10], %s1310_s8  ;;  %s1042_s27 = sshra.s32 %s1400_s15, 4  ;;  %s1043_s27 = int_to_ptr.hbm [resolvable:$true] %s1042_s27 }
  0xad   : > { %s1044_s26 = scalar_lea.hbm %s1043_s27, 2  ;;  %s1048_s18 = scalar_lea.hbm %s1460_s4, 4 }
  0xae   : > { %p1045_p6 = scmp.ne.s32.totalorder %s1043_s27, %s1044_s26  ;;  %p1049_p13 = scmp.lt.s32.totalorder %s1043_s27, %s1460_s4 }
  0xaf   : > { %p1050_p8 = scmp.lt.s32.totalorder %s1048_s18, %s1044_s26 }
  0xb0   : > { %p1046_p7 = pnand %p1045_p6, %p1208_p9 }
  0xb1   : > { %p1051_p4 = por %p1050_p8, %p1049_p13 }
  0xb2   : > { %p1047_p10 = pneg %p1046_p7 }
  0xb4   : > { %p1052_p0 = pnand %p1051_p4, %p1047_p10 }
  0xb6   : > { %1055 = shalt.err (!%p1052_p0)
}
  0xb7   : > { %819 = dma.vmem_to_hbm [thread:$0]  (%p1208_p9), %s1398_s22, 32, %s1400_s15, %s562_s12  }
  0xb8 PF: > { %s1477_s8 = sld [smem:[#allocation15_spill]]  ;;  %p823_p1 = pnand %p771_p12, %p1215_p11 }
  0xba   : > { %p824_p2 = pneg %p823_p1 }
  0xbe   : > { %s606_s30 = sand.u32 1, %s1477_s8  }
  0xbf   : > { %s607_s24 = scalar_lea.sflag [#allocation4], %s606_s30 }
  0xc0   : > { %1089 = dma.done.wait (%p824_p2), %s607_s24, 32  }
  0xc1   : > { %1091 = vsyncadd (%p824_p2), %s607_s24, 4294967264  ;;  %s617_s23 = scalar_lea.sflag [#allocation10], %s606_s30 }
  0xc2   : > { %1093 = dma.done.wait (%p824_p2), %s617_s23, 32  }
  0xc3   : > { %1095 = vsyncadd (%p824_p2), %s617_s23, 4294967264  ;;  %s27_s20 = sadd.s32 1, %s1118_s20   ;;  %s1479_s28 = sld [smem:[#allocation17_spill]] }
  0xc4   : > { %p24_p3 = scmp.ge.s32.totalorder %s27_s20, 4   ;;  %s1480_s22 = sld [smem:[#allocation16_spill]] }
  0xc5   : > { %s1481_s15 = smov %s1102_s16  ;;  %s1482_s16 = smov %s1106_s17 }
  0xc6   : > { %s1484_s18 = smov %s1114_s19  ;;  %26 = sbr.rel (!%p24_p3) target bundleno = 10 (0xa), region = 122 }
  0xc9   : > { %s1483_s17 = smov %s1479_s28 }
  0xca   : > { %s1485_s19 = smov %s1480_s22 }
  0xcb   :  { %623 = vsyncpa [#allocation3], 1 }
  0xcc   :  { %625 = vsyncpa [#allocation3 + $0x1], 1 }
  0xcd   :  { %626 = vsyncpa [#allocation6], 1 }
  0xce   :  { %628 = vsyncpa [#allocation6 + $0x1], 1 }
  0xcf   :  { %629 = vsyncpa [#allocation4], 1 }
  0xd0   :  { %631 = vsyncpa [#allocation4 + $0x1], 1 }
  0xd1   :  { %632 = vsyncpa [#allocation10], 1 }
  0xd2   :  { %634 = vsyncpa [#allocation10 + $0x1], 1 }

</bundles_post_ra>
